<compile_context>
chip_gen: v6e
topology: v6e:2x2x1
jax: 0.10.0
libtpu: 0.0.40
codegen_flags: <defaults>
</compile_context>

<pallas_src>
import jax
import jax.numpy as jnp
from jax.experimental import pallas as pl
from jax.experimental.pallas import tpu as pltpu

INPUT_SIZE = 784
HIDDEN_SIZE = 20
NUM_CLASSES = 10

HIDDEN_PAD = 128   # 20 -> one full lane group (lane-dense MXU operand)
OUT_PAD = 128      # 10 -> one full lane group (lane-dense output slab, no vst.msk)

# Batch-tile granularity: multiple of 16 sublanes so bf16-packed (16,128) tiles of
# both the x stream and the bf16 output slab are never split mid-tile.
SUBLANE_TILE = 16

# Default batch tiles (bigger tiles amortize the ~0.35us/step overhead and push the
# x stream to the HBM roofline) and an explicit scoped-VMEM limit that is safe on
# v5e/v6e (128 MiB physical) and v7x (64 MiB per TC).
DEFAULT_TILE_B_BF16 = 4096
DEFAULT_TILE_B_F32 = 2048
VMEM_LIMIT_BYTES = 28 * 1024 * 1024


def _round_up(n, m):
    return ((n + m - 1) // m) * m


def mlp_kernel(x_ref, w1_ref, b1_ref, w2_ref, b2_ref, o_ref):
    # Layer 1: [TB, 784] @ [784, 128]  (bf16/f32 operands, f32 accumulation on MXU)
    h = jnp.dot(x_ref[...], w1_ref[...], preferred_element_type=jnp.float32)
    h = jnp.maximum(h + b1_ref[...], 0.0)            # bias + ReLU on the VPU
    # Layer 2: [TB, 128] @ [128, 128]  (tiny, f32)
    out = jnp.dot(h, w2_ref[...], preferred_element_type=jnp.float32)
    o_ref[...] = (out + b2_ref[...]).astype(o_ref.dtype)


def pad_params(w1, b1, w2, b2, *, stream_dtype=jnp.bfloat16):
    """Lane-dense zero padding + streaming cast, done ONCE (hoisted out of the
    per-call path).  Exact: padded b1 entries are 0, ReLU(0)=0 and padded w2
    rows/cols are 0, so the extra lanes never contribute to the logits.
    Only w1 (the big streamed operand) is cast; biases and w2 stay f32."""
    w1p = (jnp.zeros((INPUT_SIZE, HIDDEN_PAD), jnp.float32)
           .at[:, :HIDDEN_SIZE].set(w1.astype(jnp.float32))
           .astype(stream_dtype))
    b1p = jnp.zeros((1, HIDDEN_PAD), jnp.float32).at[:, :HIDDEN_SIZE].set(b1)
    w2p = (jnp.zeros((HIDDEN_PAD, OUT_PAD), jnp.float32)
           .at[:HIDDEN_SIZE, :NUM_CLASSES].set(w2))
    b2p = jnp.zeros((1, OUT_PAD), jnp.float32).at[:, :NUM_CLASSES].set(b2)
    return w1p, b1p, w2p, b2p


def _choose_tile(batch, tile_b):
    """Pick a batch tile: multiple of SUBLANE_TILE, capped at ~half the padded
    batch whenever possible so the parallel grid has >=2 steps (both v7x TCs)."""
    bpad_min = _round_up(max(batch, 1), SUBLANE_TILE)
    tb = min(tile_b, bpad_min)
    if bpad_min >= 2 * SUBLANE_TILE:
        tb = min(tb, _round_up((bpad_min + 1) // 2, SUBLANE_TILE))
    return max(_round_up(tb, SUBLANE_TILE), SUBLANE_TILE)


def mlp_forward_padded(x, w1p, b1p, w2p, b2p, *, tile_b=None, out_dtype=None):
    """Forward pass given already-padded params (from pad_params).
    x: [B, 784].  Returns [B, 10] f32 logits."""
    B = x.shape[0]
    stream_dtype = w1p.dtype
    is_bf16 = stream_dtype == jnp.bfloat16
    if tile_b is None:
        tile_b = DEFAULT_TILE_B_BF16 if is_bf16 else DEFAULT_TILE_B_F32
    if out_dtype is None:
        out_dtype = jnp.bfloat16 if is_bf16 else jnp.float32

    x = x.astype(stream_dtype)
    tb = _choose_tile(B, tile_b)
    b_pad = _round_up(B, tb)
    if b_pad != B:
        x = jnp.pad(x, ((0, b_pad - B), (0, 0)))
    grid = (b_pad // tb,)

    in_item = jnp.dtype(stream_dtype).itemsize
    out_item = jnp.dtype(out_dtype).itemsize
    flops = 2 * b_pad * INPUT_SIZE * HIDDEN_PAD + 2 * b_pad * HIDDEN_PAD * OUT_PAD
    bytes_accessed = (in_item * b_pad * INPUT_SIZE            # x read
                      + out_item * b_pad * OUT_PAD            # output write
                      + in_item * INPUT_SIZE * HIDDEN_PAD     # w1
                      + 4 * (HIDDEN_PAD * OUT_PAD + HIDDEN_PAD + OUT_PAD))

    out_padded = pl.pallas_call(
        mlp_kernel,
        out_shape=jax.ShapeDtypeStruct((b_pad, OUT_PAD), out_dtype),
        grid_spec=pltpu.PrefetchScalarGridSpec(
            num_scalar_prefetch=0,
            grid=grid,
            in_specs=[
                # x: streamed per batch tile (double-buffered by Pallas).
                pl.BlockSpec((tb, INPUT_SIZE), lambda i: (i, 0)),
                # Weights/biases: constant index maps -> VMEM-resident across
                # steps.  (pipeline_mode=pl.Buffered(1) would reclaim the second
                # copy of each, but the working set already fits the limit.)
                pl.BlockSpec((INPUT_SIZE, HIDDEN_PAD), lambda i: (0, 0)),
                pl.BlockSpec((1, HIDDEN_PAD), lambda i: (0, 0)),
                pl.BlockSpec((HIDDEN_PAD, OUT_PAD), lambda i: (0, 0)),
                pl.BlockSpec((1, OUT_PAD), lambda i: (0, 0)),
            ],
            out_specs=pl.BlockSpec((tb, OUT_PAD), lambda i: (i, 0)),
        ),
        compiler_params=pltpu.CompilerParams(
            dimension_semantics=("parallel",),       # megacore sharding on v7x
            vmem_limit_bytes=VMEM_LIMIT_BYTES,
        ),
        cost_estimate=pl.CostEstimate(
            flops=flops, transcendentals=0, bytes_accessed=bytes_accessed),
    )(x, w1p, b1p, w2p, b2p)

    # Strip batch padding and lane padding on the class dim; return f32 logits.
    return out_padded[:B, :NUM_CLASSES].astype(jnp.float32)


def neural_network_forward(x, w1, b1, w2, b2, *, stream_bf16=True, tile_b=None,
                           out_dtype=None):
    """Convenience wrapper: pads/casts the params per call.  For repeated calls,
    pad once with pad_params() and call mlp_forward_padded() directly.
    stream_bf16=False gives the exact f32 path (parity with PyTorch within 1e-5)."""
    stream_dtype = jnp.bfloat16 if stream_bf16 else jnp.float32
    params = pad_params(w1, b1, w2, b2, stream_dtype=stream_dtype)
    return mlp_forward_padded(x, *params, tile_b=tile_b, out_dtype=out_dtype)


def init_params(key):
    """Deterministic init mimicking PyTorch nn.Linear default U(-1/sqrt(fan_in), +)."""
    k1, k2, k3, k4 = jax.random.split(key, 4)
    bound1 = 1.0 / jnp.sqrt(INPUT_SIZE)
    bound2 = 1.0 / jnp.sqrt(HIDDEN_SIZE)
    w1 = jax.random.uniform(k1, (INPUT_SIZE, HIDDEN_SIZE), jnp.float32, -bound1, bound1)
    b1 = jax.random.uniform(k2, (1, HIDDEN_SIZE), jnp.float32, -bound1, bound1)
    w2 = jax.random.uniform(k3, (HIDDEN_SIZE, NUM_CLASSES), jnp.float32, -bound2, bound2)
    b2 = jax.random.uniform(k4, (1, NUM_CLASSES), jnp.float32, -bound2, bound2)
    return w1, b1, w2, b2


def _reference(x, w1, b1, w2, b2):
    return jnp.maximum(x @ w1 + b1, 0.0) @ w2 + b2


if __name__ == "__main__":
    key = jax.random.PRNGKey(0)
    kp, kx1, kx2 = jax.random.split(key, 3)
    w1, b1, w2, b2 = init_params(kp)

    # One-time (hoisted) padded params for the default bf16 streaming path.
    params_bf16 = pad_params(w1, b1, w2, b2, stream_dtype=jnp.bfloat16)

    # Small batch: single grid step, exercises batch padding to the sublane tile.
    B1 = 8
    x1 = jax.random.normal(kx1, (B1, INPUT_SIZE), jnp.float32)
    out1 = jax.block_until_ready(mlp_forward_padded(x1, *params_bf16))
    ref1 = _reference(x1, w1, b1, w2, b2)
    assert out1.shape == (B1, NUM_CLASSES)
    assert jnp.allclose(out1, ref1, atol=2e-2, rtol=2e-2)

    # Ragged batch: exercises padding of the last tile AND >=2 grid steps
    # (so both TensorCores are used on v7x).
    B2 = 40
    x2 = jax.random.normal(kx2, (B2, INPUT_SIZE), jnp.float32)
    out2 = jax.block_until_ready(mlp_forward_padded(x2, *params_bf16))
    ref2 = _reference(x2, w1, b1, w2, b2)
    assert out2.shape == (B2, NUM_CLASSES)
    assert jnp.allclose(out2, ref2, atol=2e-2, rtol=2e-2)

    # Exact f32 path (bit-level parity with the PyTorch reference within 1e-5).
    out3 = jax.block_until_ready(
        neural_network_forward(x2, w1, b1, w2, b2, stream_bf16=False))
    assert jnp.allclose(out3, ref2, atol=1e-5, rtol=1e-5)

    print("KERNEL_OK")
</pallas_src>

<mosaic_0001>
module attributes {stable_mosaic.version = 11 : i64} {
  func.func @mlp_kernel(%arg0: i32, %arg1: memref<16x784xbf16, #tpu.memory_space<vmem>>, %arg2: memref<784x128xbf16, #tpu.memory_space<vmem>>, %arg3: memref<1x128xf32, #tpu.memory_space<vmem>>, %arg4: memref<128x128xf32, #tpu.memory_space<vmem>>, %arg5: memref<1x128xf32, #tpu.memory_space<vmem>>, %arg6: memref<16x128xbf16, #tpu.memory_space<vmem>>) attributes {dimension_semantics = [#tpu.dimension_semantics<parallel>], iteration_bounds = array<i64: 1>, scalar_prefetch = 0 : i64, scratch_operands = 0 : i64, tpu.core_type = #tpu.core_type<tc>, window_params = [{transform_indices = @transform_0, window_bounds = array<i64: 16, 784>}, {pipeline_mode = #tpu.pipeline_mode<synchronous>, transform_indices = @transform_1, window_bounds = array<i64: 784, 128>}, {pipeline_mode = #tpu.pipeline_mode<synchronous>, transform_indices = @transform_2, window_bounds = array<i64: 1, 128>}, {pipeline_mode = #tpu.pipeline_mode<synchronous>, transform_indices = @transform_3, window_bounds = array<i64: 128, 128>}, {pipeline_mode = #tpu.pipeline_mode<synchronous>, transform_indices = @transform_4, window_bounds = array<i64: 1, 128>}, {transform_indices = @transform_5, window_bounds = array<i64: 16, 128>}]} {
    %c0 = arith.constant 0 : index
    %c0_0 = arith.constant 0 : index
    %0 = vector.load %arg1[%c0, %c0_0] : memref<16x784xbf16, #tpu.memory_space<vmem>>, vector<16x784xbf16>
    %c0_1 = arith.constant 0 : index
    %c0_2 = arith.constant 0 : index
    %1 = vector.load %arg2[%c0_1, %c0_2] : memref<784x128xbf16, #tpu.memory_space<vmem>>, vector<784x128xbf16>
    %cst = arith.constant dense<0.000000e+00> : vector<16x128xf32>
    %2 = tpu.matmul %0, %1, %cst {dimension_numbers = #tpu.dot_dimension_numbers<[1], [0], [0], [1], [0, 0, 1, 1], [], []>} : vector<16x784xbf16>, vector<784x128xbf16>, vector<16x128xf32> -> vector<16x128xf32>
    %c0_3 = arith.constant 0 : index
    %c0_4 = arith.constant 0 : index
    %3 = vector.load %arg3[%c0_3, %c0_4] : memref<1x128xf32, #tpu.memory_space<vmem>>, vector<1x128xf32>
    %4 = vector.broadcast %3 : vector<1x128xf32> to vector<16x128xf32>
    %5 = arith.addf %2, %4 : vector<16x128xf32>
    %cst_5 = arith.constant 0.000000e+00 : f32
    %6 = vector.broadcast %cst_5 : f32 to vector<16x128xf32>
    %7 = arith.maximumf %5, %6 : vector<16x128xf32>
    %c0_6 = arith.constant 0 : index
    %c0_7 = arith.constant 0 : index
    %8 = vector.load %arg4[%c0_6, %c0_7] : memref<128x128xf32, #tpu.memory_space<vmem>>, vector<128x128xf32>
    %cst_8 = arith.constant dense<0.000000e+00> : vector<16x128xf32>
    %9 = tpu.matmul %7, %8, %cst_8 {dimension_numbers = #tpu.dot_dimension_numbers<[1], [0], [0], [1], [0, 0, 1, 1], [], []>} : vector<16x128xf32>, vector<128x128xf32>, vector<16x128xf32> -> vector<16x128xf32>
    %c0_9 = arith.constant 0 : index
    %c0_10 = arith.constant 0 : index
    %10 = vector.load %arg5[%c0_9, %c0_10] : memref<1x128xf32, #tpu.memory_space<vmem>>, vector<1x128xf32>
    %11 = vector.broadcast %10 : vector<1x128xf32> to vector<16x128xf32>
    %12 = arith.addf %9, %11 : vector<16x128xf32>
    %13 = arith.truncf %12 : vector<16x128xf32> to vector<16x128xbf16>
    %c0_11 = arith.constant 0 : index
    %c0_12 = arith.constant 0 : index
    %14 = vector.load %arg6[%c0_11, %c0_12] : memref<16x128xbf16, #tpu.memory_space<vmem>>, vector<16x128xbf16>
    tpu.vector_store %arg6[%c0_11, %c0_12], %13 {strides = array<i32>} : memref<16x128xbf16, #tpu.memory_space<vmem>>, vector<16x128xbf16>,
    return
  }
  func.func @transform_0(%arg0: i32) -> (i32, i32) {
    %c0_i32 = arith.constant 0 : i32
    %c0_i32_0 = arith.constant 0 : i32
    return %arg0, %c0_i32 : i32, i32
  }
  func.func @transform_1(%arg0: i32) -> (i32, i32) {
    %c0_i32 = arith.constant 0 : i32
    %c0_i32_0 = arith.constant 0 : i32
    %c0_i32_1 = arith.constant 0 : i32
    return %c0_i32, %c0_i32_0 : i32, i32
  }
  func.func @transform_2(%arg0: i32) -> (i32, i32) {
    %c0_i32 = arith.constant 0 : i32
    %c0_i32_0 = arith.constant 0 : i32
    %c0_i32_1 = arith.constant 0 : i32
    return %c0_i32, %c0_i32_0 : i32, i32
  }
  func.func @transform_3(%arg0: i32) -> (i32, i32) {
    %c0_i32 = arith.constant 0 : i32
    %c0_i32_0 = arith.constant 0 : i32
    %c0_i32_1 = arith.constant 0 : i32
    return %c0_i32, %c0_i32_0 : i32, i32
  }
  func.func @transform_4(%arg0: i32) -> (i32, i32) {
    %c0_i32 = arith.constant 0 : i32
    %c0_i32_0 = arith.constant 0 : i32
    %c0_i32_1 = arith.constant 0 : i32
    return %c0_i32, %c0_i32_0 : i32, i32
  }
  func.func @transform_5(%arg0: i32) -> (i32, i32) {
    %c0_i32 = arith.constant 0 : i32
    %c0_i32_0 = arith.constant 0 : i32
    return %arg0, %c0_i32 : i32, i32
  }
}

</mosaic_0001>

<bundles_post_ra>
// kernel: tpu_custom_call.1
= control target key start
LH: loop header
LB: loop body
LE: loop exit
PB: predicated region body
PF: predicated region fallthrough
CT: control target
= control target key end

     0   :  { %10 = vsyncpa [#allocation3], 0  ;;  %s1219_s0 = inlined_call_operand.hbm [shape: bf16[16,784], index: 0, kind: input, shape index: {}]   ;;  %s1220_s1 = inlined_call_operand.hbm [shape: bf16[784,128], index: 1, kind: input, shape index: {}]   ;;  %s1221_s2 = inlined_call_operand.vmem [shape: f32[1,128], index: 2, kind: input, shape index: {}]   ;;  %s1222_s3 = inlined_call_operand.hbm [shape: f32[128,128], index: 3, kind: input, shape index: {}]   ;;  %s1223_s4 = inlined_call_operand.vmem [shape: f32[1,128], index: 4, kind: input, shape index: {}]   ;;  %s1224_s5 = inlined_call_operand.hbm [shape: bf16[16,128], index: 5, kind: output, shape index: {}]  }
   0x1   :  { %11 = vsyncpa [#allocation6], 0 }
   0x2   :  { %12 = vsyncpa [#allocation4], 0  ;;  %s1153_s18 = smov [#allocation5]  }
   0x3   :  { %s30_s19 = sshll.u32 %s1153_s18, 4  ;;  %s31_s19 = int_to_ptr.vmem [resolvable:$true] %s30_s19 }
   0x4   :  { %s1075_s20 = scalar_lea.vmem %s31_s19, 6272  ;;  %p1080_p1 = scmp.lt.s32.totalorder %s31_s19, %s31_s19 }
   0x5   :  { %p1076_p0 = scmp.ne.s32.totalorder %s31_s19, %s1075_s20  ;;  %p1081_p2 = scmp.lt.s32.totalorder %s1075_s20, %s1075_s20 }
   0x7   :  { %p1082_p3 = por %p1081_p2, %p1080_p1 }
   0x9   :  { %p1083_p4 = pnand %p1082_p3, %p1076_p0 }
   0xb   :  { %1086 = shalt.err (!%p1083_p4)
}
   0xc   :  { %s1154_s21 = smov 64   ;;  %s1155_s22 = smov 4  }
   0xd   :  { %36 = dma.hbm_to_vmem [thread:$0]  %s1220_s1, 6272, %s31_s19, [#allocation6], %s1154_s21, %s1154_s21, %s1155_s22  }
   0xe   :  { %s1156_s25 = smov [#allocation2]  }
   0xf   :  { %s18_s26 = sshll.u32 %s1156_s25, 4  ;;  %s19_s26 = int_to_ptr.vmem [resolvable:$true] %s18_s26 }
  0x10   :  { %s1095_s27 = scalar_lea.vmem %s19_s26, 896  ;;  %p1100_p6 = scmp.lt.s32.totalorder %s19_s26, %s19_s26 }
  0x11   :  { %p1096_p5 = scmp.ne.s32.totalorder %s19_s26, %s1095_s27  ;;  %p1101_p7 = scmp.lt.s32.totalorder %s1095_s27, %s1095_s27 }
  0x13   :  { %p1102_p8 = por %p1101_p7, %p1100_p6 }
  0x15   :  { %p1103_p9 = pnand %p1102_p8, %p1096_p5 }
  0x17   :  { %1106 = shalt.err (!%p1103_p9)
}
  0x18   :  { %s1157_s28 = smov 448   ;;  %s1158_s29 = smov 28  }
  0x19   :  { %24 = dma.hbm_to_vmem [thread:$0]  %s1219_s0, 896, %s19_s26, [#allocation3], %s1157_s28, %s1157_s28, %s1158_s29  }
  0x1a   :  { %s1159_s7 = smov [#allocation7]  }
  0x1b   :  { %s44_s8 = sshll.u32 %s1159_s7, 4  ;;  %s45_s8 = int_to_ptr.vmem [resolvable:$true] %s44_s8 }
  0x1c   :  { %s1115_s1 = scalar_lea.vmem %s45_s8, 2048  ;;  %p1120_p11 = scmp.lt.s32.totalorder %s45_s8, %s45_s8 }
  0x1d   :  { %p1116_p10 = scmp.ne.s32.totalorder %s45_s8, %s1115_s1  ;;  %p1121_p12 = scmp.lt.s32.totalorder %s1115_s1, %s1115_s1 }
  0x1f   :  { %p1122_p13 = por %p1121_p12, %p1120_p11 }
  0x21   :  { %p1123_p0 = pnand %p1122_p13, %p1116_p10 }
  0x23   :  { %1126 = shalt.err (!%p1123_p0)
}
  0x24   :  { %s1160_s9 = smov 128   ;;  %s1161_s10 = smov 8  }
  0x25   :  { %50 = dma.hbm_to_vmem [thread:$0]  %s1222_s3, 2048, %s45_s8, [#allocation6], %s1160_s9, %s1160_s9, %s1161_s10  }
  0x26   :  { %1147 = dma.done.wait [#allocation3], 896  }
  0x27   :  { %1148 = vsyncadd [#allocation3], 4294966400 }
  0x28   :  { %1149 = dma.done.wait [#allocation6], 8320  }
  0x29   :  { %1150 = vsyncadd [#allocation6], 4294958976  ;;  %v1008_v0 = vld [vmem:[#allocation5 + $0x78] sm:$0xff]   ;;  %v1012_v4 = vld [vmem:[#allocation5 + $0x70] sm:$0xff]   ;;  %v1162_v38 = vmov 0.0   ;;  %vm1163_vm0 = vmmov 0  }
  0x2a   :  { %v1009_v1 = vld [vmem:[#allocation5 + $0x38] sm:$0xff]   ;;  %869 = vmatprep.subr.bf16.mxu0 %v1008_v0  ;;  %v1013_v5 = vld [vmem:[#allocation5 + $0x30] sm:$0xff]   ;;  %v1016_v8 = vld [vmem:[#allocation5 + $0x68] sm:$0xff]   ;;  %vm505_vm1 = vcmask 130048   ;;  %s1164_s14 = smov [#allocation8]  }
  0x2b   :  { %v1010_v2 = vld [vmem:[#allocation5 + $0xf8] sm:$0xff]   ;;  %870 = vmatpush3.bf16.msra.mxu0 %v1009_v1  ;;  %v1014_v6 = vld [vmem:[#allocation5 + $0xf0] sm:$0xff]   ;;  %v1017_v9 = vld [vmem:[#allocation5 + $0x28] sm:$0xff]   ;;  %s788_s15 = sshll.u32 %s1164_s14, 4  ;;  %s789_s15 = int_to_ptr.vmem [resolvable:$true] %s788_s15 }
  0x2c   :  { %v1011_v3 = vld [vmem:[#allocation5 + $0xb8] sm:$0xff]   ;;  %891 = vmatprep.subr.bf16.mxu1 %v1010_v2  ;;  %871 = vmatprep.subr.bf16.mxu0 %v1012_v4  ;;  %v1015_v7 = vld [vmem:[#allocation5 + $0xb0] sm:$0xff]   ;;  %v1018_v10 = vld [vmem:[#allocation5 + $0xe8] sm:$0xff]   ;;  %s1127_s16 = scalar_lea.vmem %s789_s15, 128  ;;  %p1132_p2 = scmp.lt.s32.totalorder %s789_s15, %s789_s15 }
  0x2d   :  { %892 = vmatpush3.bf16.msra.mxu1 %v1011_v3  ;;  %v1019_v11 = vld [vmem:[#allocation5 + $0xa8] sm:$0xff]   ;;  %v1020_v12 = vld [vmem:[#allocation5 + $0x60] sm:$0xff]   ;;  %v1024_v16 = vld [vmem:[#allocation5 + $0x58] sm:$0xff]   ;;  %p1128_p1 = scmp.ne.s32.totalorder %s789_s15, %s1127_s16  ;;  %p1133_p3 = scmp.lt.s32.totalorder %s1127_s16, %s1127_s16 }
  0x2e   :  { %893 = vmatprep.subr.bf16.mxu1 %v1014_v6  ;;  %v1021_v13 = vld [vmem:[#allocation5 + $0x20] sm:$0xff]   ;;  %v1025_v17 = vld [vmem:[#allocation5 + $0x18] sm:$0xff]   ;;  %v1028_v20 = vld [vmem:[#allocation5 + $0x50] sm:$0xff]  }
  0x2f   :  { %872 = vmatpush3.bf16.msra.mxu0 %v1013_v5  ;;  %v1022_v14 = vld [vmem:[#allocation5 + $0xe0] sm:$0xff]   ;;  %v1026_v18 = vld [vmem:[#allocation5 + $0xd8] sm:$0xff]   ;;  %v1029_v21 = vld [vmem:[#allocation5 + $0x10] sm:$0xff]   ;;  %p1134_p4 = por %p1133_p3, %p1132_p2 }
  0x30   :  { %873 = vmatprep.subr.bf16.mxu0 %v1016_v8  ;;  %v1023_v15 = vld [vmem:[#allocation5 + $0xa0] sm:$0xff]   ;;  %v1027_v19 = vld [vmem:[#allocation5 + $0x98] sm:$0xff]   ;;  %v1030_v22 = vld [vmem:[#allocation5 + $0xd0] sm:$0xff]  }
  0x31   :  { %894 = vmatpush3.bf16.msra.mxu1 %v1015_v7  ;;  %v1031_v23 = vld [vmem:[#allocation5 + $0x90] sm:$0xff]   ;;  %v1032_v24 = vld [vmem:[#allocation5 + $0x48] sm:$0xff]   ;;  %v1036_v28 = vld [vmem:[#allocation5 + $0x40] sm:$0xff]   ;;  %p1135_p5 = pnand %p1134_p4, %p1128_p1 }
  0x32   :  { %895 = vmatprep.subr.bf16.mxu1 %v1018_v10  ;;  %v1033_v25 = vld [vmem:[#allocation5 + $0x8] sm:$0xff]   ;;  %v1037_v29 = vld [vmem:[#allocation5] sm:$0xff]   ;;  %v1043_v34 = vld [vmem:[#allocation5 + $0x178] sm:$0xff]  }
  0x33   :  { %874 = vmatpush3.bf16.msra.mxu0 %v1017_v9  ;;  %v1034_v26 = vld [vmem:[#allocation5 + $0xc8] sm:$0xff]   ;;  %v1038_v30 = vld [vmem:[#allocation5 + $0xc0] sm:$0xff]   ;;  %v1046_v36 = vld [vmem:[#allocation2 + $0xc] ss:$28 sps:$4 sm:$0xff]  }
  0x34   :  { %875 = vmatprep.subr.bf16.mxu0 %v1020_v12  ;;  %v1035_v27 = vld [vmem:[#allocation5 + $0x88] sm:$0xff]   ;;  %v1042_v33 = vld [vmem:[#allocation5 + $0x80] sm:$0xff]   ;;  %v1047_v37 = vld [vmem:[#allocation5 + $0x138] sm:$0xff]   ;;  %582 = vmatprep.mubr.bf16.mxu1 %v1046_v36 }
  0x35   :  { %896 = vmatpush3.bf16.msra.mxu1 %v1019_v11  ;;  %v1039_v31 = vld [vmem:[#allocation2] ss:$28 sps:$4 sm:$0xff]   ;;  %v1044_v35 = vld [vmem:[#allocation2 + $0x8] ss:$28 sps:$4 sm:$0xff]   ;;  %v1054_v45 = vld [vmem:[#allocation5 + $0x158] sm:$0xff]  }
  0x36   :  { %897 = vmatprep.subr.bf16.mxu1 %v1022_v14  ;;  %v1041_v32 = vld [vmem:[#allocation2 + $0x4] ss:$28 sps:$4 sm:$0xff]   ;;  %v1048_v39 = vld [vmem:[#allocation5 + $0x170] sm:$0xff]   ;;  %v1052_v43 = vld [vmem:[#allocation5 + $0x160] sm:$0xff]  }
  0x37   :  { %876 = vmatpush3.bf16.msra.mxu0 %v1021_v13  ;;  %541 = vmatprep.mubr.bf16.mxu0 %v1041_v32  ;;  %v1049_v40 = vld [vmem:[#allocation5 + $0x130] sm:$0xff]   ;;  %v1050_v41 = vld [vmem:[#allocation5 + $0x168] sm:$0xff]   ;;  %v1053_v44 = vld [vmem:[#allocation5 + $0x120] sm:$0xff]  }
  0x38   :  { %877 = vmatprep.subr.bf16.mxu0 %v1024_v16  ;;  %v1051_v42 = vld [vmem:[#allocation5 + $0x128] sm:$0xff]   ;;  %v1055_v46 = vld [vmem:[#allocation5 + $0x118] sm:$0xff]   ;;  %v1056_v47 = vld [vmem:[#allocation5 + $0x150] sm:$0xff]  }
  0x39   :  { %898 = vmatpush3.bf16.msra.mxu1 %v1023_v15  ;;  %v1062_v48 = vld [vmem:[#allocation5 + $0x180] sm:$0xff]   ;;  %v1065_v49 = vld [vmem:[#allocation2 + $0x14] ss:$28 sps:$4 sm:$0xff]   ;;  %v1057_v51 = vld [vmem:[#allocation5 + $0x110] sm:$0xff]  }
  0x3a   :  { %899 = vmatprep.subr.bf16.mxu1 %v1026_v18  ;;  %v1066_v50 = vld [vmem:[#allocation2 + $0x18] ss:$28 sps:$4 sm:$0xff]   ;;  %v1058_v52 = vld [vmem:[#allocation5 + $0x148] sm:$0xff]   ;;  %v1063_v56 = vld [vmem:[#allocation2 + $0x10] ss:$28 sps:$4 sm:$0xff]  }
  0x3b   :  { %878 = vmatpush3.bf16.msra.mxu0 %v1025_v17  ;;  %v1059_v53 = vld [vmem:[#allocation5 + $0x108] sm:$0xff]   ;;  %v1060_v54 = vld [vmem:[#allocation5 + $0x140] sm:$0xff]   ;;  %v689_v58 = vld [vmem:[#allocation7 + $0x70] sm:$0xff] }
  0x3c   :  { %879 = vmatprep.subr.bf16.mxu0 %v1028_v20  ;;  %v1061_v55 = vld [vmem:[#allocation5 + $0x100] sm:$0xff]   ;;  %v688_v59 = vld [vmem:[#allocation7 + $0x68] sm:$0xff]  ;;  %v687_v60 = vld [vmem:[#allocation7 + $0x60] sm:$0xff] }
  0x3d   :  { %900 = vmatpush3.bf16.msra.mxu1 %v1027_v19  ;;  %v690_v57 = vld [vmem:[#allocation7 + $0x78] sm:$0xff]  ;;  %v685_v62 = vld [vmem:[#allocation7 + $0x50] sm:$0xff]  ;;  %v684_v63 = vld [vmem:[#allocation7 + $0x48] sm:$0xff] }
  0x3e   :  { %901 = vmatprep.subr.bf16.mxu1 %v1030_v22  ;;  %v686_v61 = vld [vmem:[#allocation7 + $0x58] sm:$0xff]  ;;  %v683_v0 = vld [vmem:[#allocation7 + $0x40] sm:$0xff]  ;;  %v681_v2 = vld [vmem:[#allocation7 + $0x30] sm:$0xff] }
  0x3f   :  { %880 = vmatpush3.bf16.msra.mxu0 %v1029_v21  ;;  %v682_v1 = vld [vmem:[#allocation7 + $0x38] sm:$0xff]  ;;  %v680_v3 = vld [vmem:[#allocation7 + $0x28] sm:$0xff]  ;;  %v679_v4 = vld [vmem:[#allocation7 + $0x20] sm:$0xff] }
  0x40   :  { %881 = vmatprep.subr.bf16.mxu0 %v1032_v24  ;;  %v678_v5 = vld [vmem:[#allocation7 + $0x18] sm:$0xff]  ;;  %v677_v6 = vld [vmem:[#allocation7 + $0x10] sm:$0xff]  ;;  %v676_v7 = vld [vmem:[#allocation7 + $0x8] sm:$0xff] }
  0x41   :  { %902 = vmatpush3.bf16.msra.mxu1 %v1031_v23  ;;  %v675_v8 = vld [vmem:[#allocation7] sm:$0xff] }
  0x42   :  { %903 = vmatprep.subr.bf16.mxu1 %v1034_v26  ;;  %v801_v21 = vld [vmem:[%s1221_s2] ss:$0 sm:$0xff] }
  0x43   :  { %882 = vmatpush3.bf16.msra.mxu0 %v1033_v25 }
  0x44   :  { %883 = vmatprep.subr.bf16.mxu0 %v1036_v28 }
  0x45   :  { %904 = vmatpush3.bf16.msra.mxu1 %v1035_v27 }
  0x46   :  { %905 = vmatprep.subr.bf16.mxu1 %v1038_v30 }
  0x47   :  { %884 = vmatpush3.bf16.msra.mxu0 %v1037_v29 }
  0x48   :  { %913 = vmatprep.subr.bf16.mxu0 %v1043_v34 }
  0x49   :  { %906 = vmatpush3.bf16.msra.mxu1 %v1042_v33 }
  0x4a   :  { %542 = vmatmul.mubr.bf16.vlgmr.msra.gmra.mxu0 %v1039_v31  ;;  %955 = vmatprep.subr.bf16.mxu1 %v1162_v38 }
  0x4b   :  { %914 = vmatpush3.bf16.msra.mxu0 %v1047_v37  ;;  %623 = vmatprep.mubr.bf16.mxu0 %v1065_v49 }
  0x4c   :  { %583 = vmatmul.mubr.bf16.vlgmr.msra.gmra.mxu1 %v1044_v35  ;;  %915 = vmatprep.subr.bf16.mxu0 %v1048_v39 }
  0x4d   :  { %957 = vmatprep.mubr.msk.bf16.mxu1 %vm1163_vm0, %v1162_v38  ;;  %956 = vmatpush3.bf16.msra.mxu1 %v1062_v48 }
  0x4e   :  { %961 = vmatprep.subr.mxu1 %v690_v57 }
  0x4f   :  { %916 = vmatpush3.bf16.msra.mxu0 %v1049_v40 }
  0x50   :  { %917 = vmatprep.subr.bf16.mxu0 %v1050_v41 }
  0x53   :  { %918 = vmatpush3.bf16.msra.mxu0 %v1051_v42 }
  0x54   :  { %919 = vmatprep.subr.bf16.mxu0 %v1052_v43  ;;  %958 = vmatmul.mubr.msk.bf16.vlgmr.msra.gmra.mxu1 %vm505_vm1, %v1066_v50  ;;  %v859_v43 = vld [vmem:[%s1223_s4] ss:$0 sm:$0xff] }
  0x55   :  { %962 = vmatpush3.msra.mxu1 %v690_v57 }
  0x56   :  { %963 = vmatprep.subr.mxu1 %v689_v58 }
  0x57   :  { %920 = vmatpush3.bf16.msra.mxu0 %v1053_v44  ;;  %964 = vmatpush3.msra.mxu1 %v689_v58 }
  0x58   :  { %921 = vmatprep.subr.bf16.mxu0 %v1054_v45  ;;  %965 = vmatprep.subr.mxu1 %v688_v59 }
  0x59   :  { %966 = vmatpush3.msra.mxu1 %v688_v59 }
  0x5a   :  { %967 = vmatprep.subr.mxu1 %v687_v60 }
  0x5b   :  { %922 = vmatpush3.bf16.msra.mxu0 %v1055_v46  ;;  %968 = vmatpush3.msra.mxu1 %v687_v60 }
  0x5c   :  { %923 = vmatprep.subr.bf16.mxu0 %v1056_v47  ;;  %969 = vmatprep.subr.mxu1 %v686_v61 }
  0x5d   :  { %970 = vmatpush3.msra.mxu1 %v686_v61 }
  0x5e   :  { %971 = vmatprep.subr.mxu1 %v685_v62 }
  0x5f   :  { %924 = vmatpush3.bf16.msra.mxu0 %v1057_v51  ;;  %972 = vmatpush3.msra.mxu1 %v685_v62 }
  0x60   :  { %925 = vmatprep.subr.bf16.mxu0 %v1058_v52  ;;  %973 = vmatprep.subr.mxu1 %v684_v63 }
  0x61   :  { %974 = vmatpush3.msra.mxu1 %v684_v63 }
  0x62   :  { %975 = vmatprep.subr.mxu1 %v683_v0 }
  0x63   :  { %926 = vmatpush3.bf16.msra.mxu0 %v1059_v53  ;;  %976 = vmatpush3.msra.mxu1 %v683_v0 }
  0x64   :  { %927 = vmatprep.subr.bf16.mxu0 %v1060_v54  ;;  %977 = vmatprep.subr.mxu1 %v682_v1 }
  0x65   :  { %978 = vmatpush3.msra.mxu1 %v682_v1 }
  0x66   :  { %979 = vmatprep.subr.mxu1 %v681_v2 }
  0x67   :  { %928 = vmatpush3.bf16.msra.mxu0 %v1061_v55  ;;  %980 = vmatpush3.msra.mxu1 %v681_v2 }
  0x68   :  { %981 = vmatprep.subr.mxu1 %v680_v3 }
  0x69   :  { %982 = vmatpush3.msra.mxu1 %v680_v3 }
  0x6a   :  { %624 = vmatmul.mubr.bf16.vlgmr.msra.gmra.mxu0 %v1063_v56  ;;  %983 = vmatprep.subr.mxu1 %v679_v4 }
  0x6b   :  { %984 = vmatpush3.msra.mxu1 %v679_v4 }
  0x6c   :  { %985 = vmatprep.subr.mxu1 %v678_v5 }
  0x6d   :  { %986 = vmatpush3.msra.mxu1 %v678_v5 }
  0x6e   :  { %987 = vmatprep.subr.mxu1 %v677_v6 }
  0x6f   :  { %988 = vmatpush3.msra.mxu1 %v677_v6 }
  0x70   :  { %989 = vmatprep.subr.mxu1 %v676_v7 }
  0x71   :  { %990 = vmatpush3.msra.mxu1 %v676_v7 }
  0x72   :  { %991 = vmatprep.subr.mxu1 %v675_v8 }
  0x73   :  { %992 = vmatpush3.msra.mxu1 %v675_v8 }
 0x10a   :  { %v885_v12 = vpop.f32.mrf.mxu0 }
 0x10c   :  { %v907_v9 = vpop.f32.mrf.mxu1  ;;  %v886_v15 = vpop.f32.mrf.mxu0 }
 0x10d   :  { %v887_v20 = vadd.f32 %v886_v15, %v885_v12 }
 0x10e   :  { %v908_v10 = vpop.f32.mrf.mxu1  ;;  %v888_v18 = vpop.f32.mrf.mxu0 }
 0x10f   :  { %v544_v23 = vadd.f32 %v887_v20, %v801_v21  ;;  %v909_v24 = vadd.f32 %v908_v10, %v907_v9 }
 0x110   :  { %v910_v11 = vpop.f32.mrf.mxu1  ;;  %v889_v22 = vpop.f32.mrf.mxu0 }
 0x111   :  { %v890_v25 = vadd.f32 %v889_v22, %v888_v18  ;;  %v585_v28 = vadd.f32 %v909_v24, %v544_v23 }
 0x112   :  { %v911_v13 = vpop.f32.mrf.mxu1 }
 0x113   :  { %v547_v29 = vadd.f32 %v890_v25, %v801_v21  ;;  %v912_v30 = vadd.f32 %v911_v13, %v910_v11 }
 0x114   :  { %v666_v14 = vpop.f32.mrf.mxu1 }
 0x115   :  { %v588_v35 = vadd.f32 %v912_v30, %v547_v29 }
 0x116   :  { %v959_v16 = vpop.f32.mrf.mxu1 }
 0x118   :  { %v669_v17 = vpop.f32.mrf.mxu1 }
 0x11a   :  { %v960_v19 = vpop.f32.mrf.mxu1 }
 0x12a   :  { %v929_v26 = vpop.f32.mrf.mxu0 }
 0x12c   :  { %v930_v27 = vpop.f32.mrf.mxu0 }
 0x12d   :  { %v931_v31 = vadd.f32 %v930_v27, %v929_v26 }
 0x12e   :  { %v932_v32 = vpop.f32.mrf.mxu0 }
 0x12f   :  { %v626_v33 = vadd.f32 %v931_v31, %v585_v28 }
 0x130   :  { %v933_v34 = vpop.f32.mrf.mxu0 }
 0x131   :  { %v934_v36 = vadd.f32 %v933_v34, %v932_v32  ;;  %v667_v37 = vadd.f32 %v666_v14, %v626_v33 }
 0x133   :  { %v629_v38 = vadd.f32 %v934_v36, %v588_v35  ;;  %v673_v39 = vmax.f32 %v667_v37, 0.0 }
 0x135   :  { %v670_v40 = vadd.f32 %v669_v17, %v629_v38  ;;  %993 = vmatprep.mubr.f32.mxu1 %v673_v39 }
 0x137   :  { %v674_v41 = vmax.f32 %v670_v40, 0.0 }
 0x139   :  { %994 = vmatmul.mubr.f32.vlgmr.msra.gmra.mxu1 %v674_v41 }
 0x1f9   :  { %v995_v42 = vpop.f32.mrf.mxu1 }
 0x1fa   :  { %v770_v45 = vadd.f32 %v995_v42, %v859_v43 }
 0x1fb   :  { %v764_v44 = vpop.f32.mrf.mxu1 }
 0x1fc   :  { %v765_v46 = vadd.f32 %v859_v43, %v764_v44 }
 0x1fe   :  { %v867_v47 = vpack.c.bf16 %v770_v45, %v765_v46 }
 0x200   :  { %868 = vst [vmem:[#allocation8] sm:$0xff] %v867_v47  }
 0x201   :  { %1138 = shalt.err (!%p1135_p5)
}
 0x202   :  { %794 = dma.vmem_to_hbm [thread:$0]  %s789_s15, 128, %s1224_s5, [#allocation4], %s1154_s21, %s1154_s21, %s1155_s22  }
 0x203   :  { %1151 = dma.done.wait [#allocation4], 128  }
 0x204   :  { %1152 = vsyncadd [#allocation4], 4294967168 }
 0x205   :  { %798 = vsyncpa [#allocation3], 1 }
 0x206   :  { %799 = vsyncpa [#allocation6], 1 }
 0x207   :  { %800 = vsyncpa [#allocation4], 1 }

</bundles_post_ra>
